<compile_context>
chip_gen: v6e
topology: v6e:2x2x1
jax: 0.10.0
libtpu: 0.0.40
codegen_flags: <defaults>
</compile_context>

<pallas_src>
import functools

import jax
import jax.numpy as jnp
from jax import lax
from jax.experimental import pallas as pl
from jax.experimental.pallas import tpu as pltpu


_INV_SQRT2 = 0.7071067811865476        # 1/sqrt(2), folded constant
_SQRT_2_OVER_PI = 0.7978845608028654   # sqrt(2/pi), for optional tanh approx


def _round_up(x, m):
    return ((x + m - 1) // m) * m


def _gelu(h, approx_tanh):
    if approx_tanh:
        # tanh lowers to the EUP (separate issue slot from the VALU).
        return 0.5 * h * (1.0 + jnp.tanh(_SQRT_2_OVER_PI * (h + 0.044715 * h * h * h)))
    # Exact GELU (matches the torch.erf formulation), computed in f32.
    return h * 0.5 * (1.0 + lax.erf(h * _INV_SQRT2))


# ----------------------------------------------------------------------------
# Kernel 1: resident weights, 1-D grid over M tiles, in-kernel I reduction.
# ----------------------------------------------------------------------------
def _resident_kernel(x_ref, w1_ref, b1_ref, w2_ref, b2_ref, o_ref, *scratch,
                     n_chunks, chunk, approx_gelu):
    # If no scratch was allocated, the (f32) output block itself is the
    # accumulator (it stays resident for the whole in-kernel reduction).
    acc_ref = scratch[0] if scratch else o_ref

    x = x_ref[...]
    # Initialize the accumulator with the output bias broadcast over rows
    # (mathematically identical to adding b2 at the end, saves a pass).
    acc_ref[...] = jnp.broadcast_to(b2_ref[...], acc_ref.shape).astype(acc_ref.dtype)

    # Statically unrolled chunk loop over the intermediate dimension: the VPU
    # GELU of chunk c has no dependence on the MXU work of other chunks except
    # through acc_ref, so the scheduler can overlap matmul2(c) with GELU(c+1).
    for c in range(n_chunks):
        lo = c * chunk
        h = jnp.dot(x, w1_ref[:, lo:lo + chunk],
                    preferred_element_type=jnp.float32)
        h = h + b1_ref[:, lo:lo + chunk]          # f32 bias, broadcast [1, chunk]
        g = _gelu(h, approx_gelu)
        acc_ref[...] += jnp.dot(g.astype(w2_ref.dtype), w2_ref[lo:lo + chunk, :],
                                preferred_element_type=jnp.float32)

    if scratch:
        o_ref[...] = acc_ref[...].astype(o_ref.dtype)


# ----------------------------------------------------------------------------
# Kernel 2: streamed-weight fallback (M tiles x I reduction grid).
# ----------------------------------------------------------------------------
def _streamed_kernel(x_ref, w1_ref, b1_ref, w2_ref, b2_ref, o_ref, acc_ref, *,
                     approx_gelu):
    k = pl.program_id(1)

    @pl.when(k == 0)
    def _():
        acc_ref[...] = jnp.broadcast_to(b2_ref[...], acc_ref.shape)

    h = jnp.dot(x_ref[...], w1_ref[...], preferred_element_type=jnp.float32)
    h = h + b1_ref[...]
    g = _gelu(h, approx_gelu)
    acc_ref[...] += jnp.dot(g.astype(w2_ref.dtype), w2_ref[...],
                            preferred_element_type=jnp.float32)

    @pl.when(k == pl.num_programs(1) - 1)
    def _():
        o_ref[...] = acc_ref[...].astype(o_ref.dtype)


# ----------------------------------------------------------------------------
# Helpers: per-generation VMEM limit & residency decision.
# ----------------------------------------------------------------------------
def _vmem_limit_bytes():
    cap = 64 * 1024 * 1024                      # conservative default (v7x-class)
    try:
        info = pltpu.get_tpu_info()
        cap = int(getattr(info, "vmem_capacity_bytes", cap))
    except Exception:
        pass
    if cap <= 64 * 1024 * 1024:                 # v7x: leave compiler headroom
        return int(cap * 0.8)
    return min(int(cap * 0.85), 110 * 1024 * 1024)   # v5e/v6e: allow big tiles


def _resident_fits(tm, hidden, inter, compute_dtype, out_dtype, budget_bytes):
    cb = jnp.dtype(compute_dtype).itemsize
    ob = jnp.dtype(out_dtype).itemsize
    weights = 2 * 2 * hidden * inter * cb       # W1 + W2, x2 buffering slack
    x_buf = 2 * tm * hidden * cb                # double-buffered input tile
    out_buf = 2 * tm * hidden * ob              # double-buffered output tile
    acc = 0 if jnp.dtype(out_dtype) == jnp.dtype(jnp.float32) else tm * hidden * 4
    tmp = 2 * tm * min(inter, 512) * 4          # h / GELU chunk temporaries
    bias = 2 * 4 * (inter + hidden)
    return weights + x_buf + out_buf + acc + tmp + bias <= budget_bytes


# ----------------------------------------------------------------------------
# Wrapper.
# ----------------------------------------------------------------------------
def bert_mlp(x, w1, b1, w2, b2, *, tile_m=512, tile_i=None,
             compute_dtype=jnp.bfloat16, approx_gelu=False,
             force_streamed=False):
    """x: [batch, seq, H]; w1: [H, I]; b1: [I]; w2: [I, H]; b2: [H].

    compute_dtype: matmul input dtype (bf16 default = MXU fast path on
    v6e/v7x; pass None to keep x's dtype).  Bias add / GELU / accumulation are
    always f32; the output keeps x's original dtype.
    """
    batch, seq, hidden = x.shape
    inter = w1.shape[1]
    out_dtype = x.dtype

    if compute_dtype is not None:
        x = x.astype(compute_dtype)
        w1 = w1.astype(compute_dtype)
        w2 = w2.astype(compute_dtype)
    cdt = x.dtype
    b1_2 = b1.astype(jnp.float32).reshape(1, inter)
    b2_2 = b2.astype(jnp.float32).reshape(1, hidden)

    M = batch * seq
    x2 = x.reshape(M, hidden)

    # --- M (token) tile: large (feeds the MXU), multiple of 8 sublanes; keep
    # at least two tiles where possible so both v7x TensorCores get work.
    tm = max(8, min(_round_up(tile_m, 8), _round_up(M, 8)))
    if M > 8 and _round_up(M, tm) // tm < 2:
        tm = max(8, _round_up((M + 1) // 2, 8))
    m_pad = _round_up(M, tm)
    if m_pad != M:     # only pays an extra pass when the tile doesn't divide M
        x2 = jnp.pad(x2, ((0, m_pad - M), (0, 0)))
    n_m = m_pad // tm

    vmem_limit = _vmem_limit_bytes()

    # Advisory cost estimate for XLA's scheduler.
    cost = pl.CostEstimate(
        flops=4 * M * hidden * inter,
        transcendentals=M * inter,
        bytes_accessed=int(x2.size * x2.dtype.itemsize
                           + w1.size * w1.dtype.itemsize
                           + w2.size * w2.dtype.itemsize
                           + b1_2.size * 4 + b2_2.size * 4
                           + M * hidden * jnp.dtype(out_dtype).itemsize))

    use_resident = (not force_streamed) and _resident_fits(
        tm, hidden, inter, cdt, out_dtype, int(0.9 * vmem_limit))

    if use_resident:
        # ---------------- resident-weight path ----------------
        chunk = inter
        for cand in (512, 256, 128):
            if inter % cand == 0:
                chunk = cand
                break
        n_chunks = inter // chunk

        scratch_shapes = []
        if jnp.dtype(out_dtype) != jnp.dtype(jnp.float32):
            scratch_shapes = [pltpu.VMEM((tm, hidden), jnp.float32)]

        kernel = functools.partial(_resident_kernel, n_chunks=n_chunks,
                                   chunk=chunk, approx_gelu=approx_gelu)

        out2 = pl.pallas_call(
            kernel,
            out_shape=jax.ShapeDtypeStruct((m_pad, hidden), out_dtype),
            grid_spec=pltpu.PrefetchScalarGridSpec(
                num_scalar_prefetch=0,
                grid=(n_m,),
                in_specs=[
                    pl.BlockSpec((tm, hidden), lambda i: (i, 0)),       # x tile
                    pl.BlockSpec((hidden, inter), lambda i: (0, 0)),    # W1 (resident)
                    pl.BlockSpec((1, inter), lambda i: (0, 0)),         # b1
                    pl.BlockSpec((inter, hidden), lambda i: (0, 0)),    # W2 (resident)
                    pl.BlockSpec((1, hidden), lambda i: (0, 0)),        # b2
                ],
                out_specs=pl.BlockSpec((tm, hidden), lambda i: (i, 0)),
                scratch_shapes=scratch_shapes,
            ),
            compiler_params=pltpu.CompilerParams(
                dimension_semantics=("parallel",),
                vmem_limit_bytes=vmem_limit,
            ),
            cost_estimate=cost,
        )(x2, w1, b1_2, w2, b2_2)
    else:
        # ---------------- streamed-weight fallback ----------------
        if tile_i is None:
            tile_i = inter
            for cand in (1024, 512, 256, 128):
                if inter % cand == 0:
                    tile_i = cand
                    break
        assert inter % tile_i == 0, "intermediate_size must be divisible by tile_i"

        kernel = functools.partial(_streamed_kernel, approx_gelu=approx_gelu)

        out2 = pl.pallas_call(
            kernel,
            out_shape=jax.ShapeDtypeStruct((m_pad, hidden), out_dtype),
            grid_spec=pltpu.PrefetchScalarGridSpec(
                num_scalar_prefetch=0,
                grid=(n_m, inter // tile_i),
                in_specs=[
                    pl.BlockSpec((tm, hidden), lambda i, k: (i, 0)),     # x
                    pl.BlockSpec((hidden, tile_i), lambda i, k: (0, k)),  # W1 slice
                    pl.BlockSpec((1, tile_i), lambda i, k: (0, k)),       # b1 slice
                    pl.BlockSpec((tile_i, hidden), lambda i, k: (k, 0)),  # W2 slice
                    pl.BlockSpec((1, hidden), lambda i, k: (0, 0)),       # b2
                ],
                out_specs=pl.BlockSpec((tm, hidden), lambda i, k: (i, 0)),
                scratch_shapes=[pltpu.VMEM((tm, hidden), jnp.float32)],
            ),
            compiler_params=pltpu.CompilerParams(
                dimension_semantics=("parallel", "arbitrary"),
                vmem_limit_bytes=vmem_limit,
            ),
            cost_estimate=cost,
        )(x2, w1, b1_2, w2, b2_2)

    if m_pad != M:
        out2 = out2[:M]
    return out2.reshape(batch, seq, hidden)


def reference_mlp(x, w1, b1, w2, b2):
    h = jnp.einsum("bsh,hi->bsi", x, w1) + b1
    g = h * 0.5 * (1.0 + lax.erf(h / jnp.sqrt(2.0)))
    return jnp.einsum("bsi,ih->bsh", g, w2) + b2


if __name__ == "__main__":
    batch, seq, hidden, inter = 2, 8, 32, 128

    key = jax.random.PRNGKey(0)
    kx, k1, k2, k3, k4 = jax.random.split(key, 5)

    x = jax.random.normal(kx, (batch, seq, hidden), dtype=jnp.float32)
    # Same shapes as nn.Linear weights, pre-transposed for row-major matmul.
    w1 = jax.random.normal(k1, (hidden, inter), dtype=jnp.float32) * 0.02
    b1 = jax.random.normal(k2, (inter,), dtype=jnp.float32) * 0.02
    w2 = jax.random.normal(k3, (inter, hidden), dtype=jnp.float32) * 0.02
    b2 = jax.random.normal(k4, (hidden,), dtype=jnp.float32) * 0.02

    ref = reference_mlp(x, w1, b1, w2, b2)

    # 1) f32 resident-weight path: must match the exact-erf reference tightly.
    out = jax.block_until_ready(bert_mlp(x, w1, b1, w2, b2, compute_dtype=None))
    assert out.shape == (batch, seq, hidden)
    assert jnp.allclose(out, ref, atol=1e-5, rtol=1e-5), "f32 mismatch vs reference"

    # 2) Default bf16 MXU path (f32 accumulation) — loose tolerance.
    out_bf16 = jax.block_until_ready(bert_mlp(x, w1, b1, w2, b2))
    assert out_bf16.shape == (batch, seq, hidden)
    assert float(jnp.max(jnp.abs(out_bf16 - ref))) < 5e-2, "bf16 path diverged"

    # 3) Streamed-weight fallback path (used when W1/W2 exceed the VMEM budget).
    out_s = jax.block_until_ready(
        bert_mlp(x, w1, b1, w2, b2, compute_dtype=None, force_streamed=True))
    assert jnp.allclose(out_s, ref, atol=1e-5, rtol=1e-5), "streamed-path mismatch"

    # 4) Optional tanh-approx GELU (EUP) — loose tolerance vs exact erf.
    out_t = jax.block_until_ready(
        bert_mlp(x, w1, b1, w2, b2, compute_dtype=None, approx_gelu=True))
    assert float(jnp.max(jnp.abs(out_t - ref))) < 5e-2, "tanh GELU diverged"

    # 5) Ragged M (batch*seq not a multiple of the tile) exercises padding.
    xr = jax.random.normal(kx, (3, 5, hidden), dtype=jnp.float32)
    out_r = jax.block_until_ready(
        bert_mlp(xr, w1, b1, w2, b2, compute_dtype=None, tile_m=8))
    assert jnp.allclose(out_r, reference_mlp(xr, w1, b1, w2, b2),
                        atol=1e-5, rtol=1e-5), "padded-M mismatch vs reference"

    print("KERNEL_OK")
</pallas_src>

<mosaic_0001>
module attributes {stable_mosaic.version = 11 : i64} {
  func.func @_resident_kernel(%arg0: i32, %arg1: memref<8x32xf32, #tpu.memory_space<vmem>>, %arg2: memref<32x128xf32, #tpu.memory_space<vmem>>, %arg3: memref<1x128xf32, #tpu.memory_space<vmem>>, %arg4: memref<128x32xf32, #tpu.memory_space<vmem>>, %arg5: memref<1x32xf32, #tpu.memory_space<vmem>>, %arg6: memref<8x32xf32, #tpu.memory_space<vmem>>) attributes {dimension_semantics = [#tpu.dimension_semantics<parallel>], iteration_bounds = array<i64: 2>, scalar_prefetch = 0 : i64, scratch_operands = 0 : i64, tpu.core_type = #tpu.core_type<tc>, window_params = [{transform_indices = @transform_0, window_bounds = array<i64: 8, 32>}, {pipeline_mode = #tpu.pipeline_mode<synchronous>, transform_indices = @transform_1, window_bounds = array<i64: 32, 128>}, {pipeline_mode = #tpu.pipeline_mode<synchronous>, transform_indices = @transform_2, window_bounds = array<i64: 1, 128>}, {pipeline_mode = #tpu.pipeline_mode<synchronous>, transform_indices = @transform_3, window_bounds = array<i64: 128, 32>}, {pipeline_mode = #tpu.pipeline_mode<synchronous>, transform_indices = @transform_4, window_bounds = array<i64: 1, 32>}, {transform_indices = @transform_5, window_bounds = array<i64: 8, 32>}]} {
    %c0 = arith.constant 0 : index
    %c0_0 = arith.constant 0 : index
    %0 = vector.load %arg1[%c0, %c0_0] : memref<8x32xf32, #tpu.memory_space<vmem>>, vector<8x32xf32>
    %c0_1 = arith.constant 0 : index
    %c0_2 = arith.constant 0 : index
    %1 = vector.load %arg5[%c0_1, %c0_2] : memref<1x32xf32, #tpu.memory_space<vmem>>, vector<1x32xf32>
    %2 = vector.shape_cast %1 : vector<1x32xf32> to vector<1x32xf32>
    %3 = vector.broadcast %2 : vector<1x32xf32> to vector<8x32xf32>
    %c0_3 = arith.constant 0 : index
    %c0_4 = arith.constant 0 : index
    %4 = vector.load %arg6[%c0_3, %c0_4] : memref<8x32xf32, #tpu.memory_space<vmem>>, vector<8x32xf32>
    tpu.vector_store %arg6[%c0_3, %c0_4], %3 {strides = array<i32>} : memref<8x32xf32, #tpu.memory_space<vmem>>, vector<8x32xf32>,
    %c0_5 = arith.constant 0 : index
    %c0_6 = arith.constant 0 : index
    %5 = vector.load %arg2[%c0_5, %c0_6] : memref<32x128xf32, #tpu.memory_space<vmem>>, vector<32x128xf32>
    %cst = arith.constant dense<0.000000e+00> : vector<8x128xf32>
    %6 = tpu.matmul %0, %5, %cst {dimension_numbers = #tpu.dot_dimension_numbers<[1], [0], [0], [1], [0, 0, 1, 1], [], []>} : vector<8x32xf32>, vector<32x128xf32>, vector<8x128xf32> -> vector<8x128xf32>
    %c0_7 = arith.constant 0 : index
    %c0_8 = arith.constant 0 : index
    %7 = vector.load %arg3[%c0_7, %c0_8] : memref<1x128xf32, #tpu.memory_space<vmem>>, vector<1x128xf32>
    %8 = vector.broadcast %7 : vector<1x128xf32> to vector<8x128xf32>
    %9 = arith.addf %6, %8 : vector<8x128xf32>
    %cst_9 = arith.constant 5.000000e-01 : f32
    %10 = vector.broadcast %cst_9 : f32 to vector<8x128xf32>
    %11 = arith.mulf %9, %10 : vector<8x128xf32>
    %cst_10 = arith.constant 0.707106769 : f32
    %12 = vector.broadcast %cst_10 : f32 to vector<8x128xf32>
    %13 = arith.mulf %9, %12 : vector<8x128xf32>
    %14 = math.erf %13 : vector<8x128xf32>
    %cst_11 = arith.constant 1.000000e+00 : f32
    %15 = vector.broadcast %cst_11 : f32 to vector<8x128xf32>
    %16 = arith.addf %15, %14 : vector<8x128xf32>
    %17 = arith.mulf %11, %16 : vector<8x128xf32>
    %c0_12 = arith.constant 0 : index
    %c0_13 = arith.constant 0 : index
    %18 = vector.load %arg6[%c0_12, %c0_13] : memref<8x32xf32, #tpu.memory_space<vmem>>, vector<8x32xf32>
    %c0_14 = arith.constant 0 : index
    %c0_15 = arith.constant 0 : index
    %19 = vector.load %arg4[%c0_14, %c0_15] : memref<128x32xf32, #tpu.memory_space<vmem>>, vector<128x32xf32>
    %cst_16 = arith.constant dense<0.000000e+00> : vector<8x32xf32>
    %20 = tpu.matmul %17, %19, %cst_16 {dimension_numbers = #tpu.dot_dimension_numbers<[1], [0], [0], [1], [0, 0, 1, 1], [], []>} : vector<8x128xf32>, vector<128x32xf32>, vector<8x32xf32> -> vector<8x32xf32>
    %21 = arith.addf %18, %20 : vector<8x32xf32>
    %c0_17 = arith.constant 0 : index
    %c0_18 = arith.constant 0 : index
    %22 = vector.load %arg6[%c0_17, %c0_18] : memref<8x32xf32, #tpu.memory_space<vmem>>, vector<8x32xf32>
    tpu.vector_store %arg6[%c0_17, %c0_18], %21 {strides = array<i32>} : memref<8x32xf32, #tpu.memory_space<vmem>>, vector<8x32xf32>,
    return
  }
  func.func @transform_0(%arg0: i32) -> (i32, i32) {
    %c0_i32 = arith.constant 0 : i32
    %c0_i32_0 = arith.constant 0 : i32
    return %arg0, %c0_i32 : i32, i32
  }
  func.func @transform_1(%arg0: i32) -> (i32, i32) {
    %c0_i32 = arith.constant 0 : i32
    %c0_i32_0 = arith.constant 0 : i32
    %c0_i32_1 = arith.constant 0 : i32
    return %c0_i32, %c0_i32_0 : i32, i32
  }
  func.func @transform_2(%arg0: i32) -> (i32, i32) {
    %c0_i32 = arith.constant 0 : i32
    %c0_i32_0 = arith.constant 0 : i32
    %c0_i32_1 = arith.constant 0 : i32
    return %c0_i32, %c0_i32_0 : i32, i32
  }
  func.func @transform_3(%arg0: i32) -> (i32, i32) {
    %c0_i32 = arith.constant 0 : i32
    %c0_i32_0 = arith.constant 0 : i32
    %c0_i32_1 = arith.constant 0 : i32
    return %c0_i32, %c0_i32_0 : i32, i32
  }
  func.func @transform_4(%arg0: i32) -> (i32, i32) {
    %c0_i32 = arith.constant 0 : i32
    %c0_i32_0 = arith.constant 0 : i32
    %c0_i32_1 = arith.constant 0 : i32
    return %c0_i32, %c0_i32_0 : i32, i32
  }
  func.func @transform_5(%arg0: i32) -> (i32, i32) {
    %c0_i32 = arith.constant 0 : i32
    %c0_i32_0 = arith.constant 0 : i32
    return %arg0, %c0_i32 : i32, i32
  }
}

</mosaic_0001>

<bundles_post_ra>
// kernel: tpu_custom_call.1
= control target key start
LH: loop header
LB: loop body
LE: loop exit
PB: predicated region body
PF: predicated region fallthrough
CT: control target
= control target key end

     0   :  { %10 = vsyncpa [#allocation3], 0  ;;  %s886_s0 = inlined_call_operand.vmem [shape: f32[16,32], index: 0, kind: input, shape index: {}]   ;;  %s887_s1 = inlined_call_operand.vmem [shape: f32[32,128], index: 1, kind: input, shape index: {}]   ;;  %s888_s2 = inlined_call_operand.vmem [shape: f32[1,128], index: 2, kind: input, shape index: {}]   ;;  %s889_s3 = inlined_call_operand.vmem [shape: f32[128,32], index: 3, kind: input, shape index: {}]   ;;  %s890_s4 = inlined_call_operand.vmem [shape: f32[1,32], index: 4, kind: input, shape index: {}]   ;;  %s891_s5 = inlined_call_operand.hbm [shape: f32[16,32], index: 5, kind: output, shape index: {}]  }
   0x1   :  { %12 = vsyncpa [#allocation3 + $0x1], 0  ;;  %s700_s18 = smov 0   ;;  %s702_s19 = smov 0  }
   0x2   :  { %s704_s20 = smov 0   ;;  %s706_s21 = smov 0  }
   0x3 LB: > { %s721_s22 = sadd.s32 4294967295, %s665_s21   ;;  %s481_s23 = sadd.s32 4294967294, %s665_s21   ;;  %s665_s21 = sphi %s706_s21, %s897_s21   ;;  %s661_s20 = sphi %s704_s20, %s896_s20   ;;  %s657_s19 = sphi %s702_s19, %s895_s19   ;;  %s653_s18 = sphi %s700_s18, %s894_s18  }
   0x4   : > { %s725_s24 = sadd.s32 1, %s665_s21   ;;  %s135_s25 = sadd.s32 1, %s661_s20 }
   0x5   : > { %s132_s26 = ssub.s32 %s665_s21, %s725_s24  ;;  %p145_p0 = scmp.ne.s32.totalorder %s661_s20, %s657_s19 }
   0x6   : > { %p133_p1 = scmp.eq.s32.totalorder %s132_s26, 0  ;;  %p146_p2 = scmp.eq.s32.totalorder %s721_s22, 1 }
   0x7   : > { %p151_p3 = scmp.ne.s32.totalorder %s657_s19, %s653_s18  ;;  %p152_p4 = scmp.eq.s32.totalorder %s481_s23, 1 }
   0x8   : > { %s736_s27 = scalar_select %p133_p1, %s661_s20, %s135_s25  }
   0x9   : > { %p738_p5 = por %p146_p2, %p145_p0  ;;  %p742_p6 = por %p152_p4, %p151_p3 }
   0xa   : > { %p484_p7 = scmp.ge.s32.totalorder %s665_s21, 1  ;;  %p189_p8 = scmp.lt.s32.totalorder %s665_s21, 3 }
   0xc   : > { %p190_p9 = pnand %p484_p7, %p189_p8 }
   0xd   : > { %p216_p10 = scmp.lt.s32.totalorder (!%p190_p9), %s721_s22, 1  ;;  %s213_s23 = sand.u32 (!%p190_p9), 1, %s657_s19  }
   0xe   : > { %193 = sbr.rel (%p190_p9) target bundleno = 451 (0x1c3), region = 40  ;;  %s485_s30 = sshll.u32 (!%p190_p9), %s213_s23, 3 }
   0xf   : > { %s215_s6 = scalar_lea.vmem (!%p190_p9), [#allocation2], %s485_s30  ;;  %s491_s9 = sshll.u32 (!%p190_p9), %s721_s22, 7 }
  0x10   : > { %s422_s10 = sshll.u32 (!%p190_p9), %s215_s6, 4  ;;  %s850_s13 = scalar_lea.hbm (!%p190_p9), %s891_s5, %s491_s9  ;;  %s423_s10 = int_to_ptr.vmem [resolvable:$true] %s422_s10 }
  0x11   : > { %s409_s14 = scalar_lea.sflag (!%p190_p9), [#allocation3], %s213_s23  ;;  %s605_s15 = scalar_lea.vmem (!%p190_p9), %s423_s10, 128 }
  0x12   : > { %p606_p11 = scmp.ne.s32.totalorder (!%p190_p9), %s423_s10, %s605_s15 }
  0x13   : > { %v233_v0 = vld [vmem:[%s887_s1 + $0x18] sm:$0xff]  ;;  %v667_v1 = vmov 0.0   ;;  %v232_v2 = vld [vmem:[%s887_s1 + $0x10] sm:$0xff]  ;;  %vm668_vm0 = vmmov 0   ;;  %s217_s11 = scalar_select %p216_p10, %s721_s22, 1  ;;  %v231_v5 = vld [vmem:[%s887_s1 + $0x8] sm:$0xff] }
  0x14   : > { %516 = vmatprep.subr.mxu0 %v667_v1  ;;  %524 = vmatprep.mubr.msk.f32.mxu0 %vm668_vm0, %v667_v1  ;;  %v335_v3 = vld [vmem:[%s889_s3 + $0x78] sm:$0xff]  ;;  %v334_v4 = vld [vmem:[%s889_s3 + $0x70] sm:$0xff]  ;;  %v333_v6 = vld [vmem:[%s889_s3 + $0x68] sm:$0xff]  ;;  %vm228_vm1 = vcmask 261120   ;;  %p607_p12 = pnand %p606_p11, %p738_p5 }
  0x15   : > { %517 = vmatpush3.msra.mxu0 %v233_v0  ;;  %527 = vmatprep.subr.mxu1 %v667_v1  ;;  %s486_s16 = sshll.u32 %s217_s11, 3  ;;  %v230_v7 = vld [vmem:[%s887_s1] sm:$0xff]  ;;  %v331_v10 = vld [vmem:[%s889_s3 + $0x58] sm:$0xff]  ;;  %v330_v11 = vld [vmem:[%s889_s3 + $0x50] sm:$0xff] }
  0x16   : > { %518 = vmatprep.subr.mxu0 %v667_v1  ;;  %528 = vmatpush3.msra.mxu1 %v335_v3  ;;  %s219_s7 = scalar_lea.vmem %s886_s0, %s486_s16  ;;  %v332_v9 = vld [vmem:[%s889_s3 + $0x60] sm:$0xff]  ;;  %v329_v12 = vld [vmem:[%s889_s3 + $0x48] sm:$0xff]  ;;  %v327_v14 = vld [vmem:[%s889_s3 + $0x38] sm:$0xff]  ;;  %p608_p13 = pneg %p607_p12 }
  0x17   : > { %519 = vmatpush3.msra.mxu0 %v232_v2  ;;  %529 = vmatprep.subr.mxu1 %v667_v1  ;;  %v220_v8 = vld [vmem:[%s219_s7] sm:$0xff]  ;;  %v326_v15 = vld [vmem:[%s889_s3 + $0x30] sm:$0xff]  ;;  %v325_v16 = vld [vmem:[%s889_s3 + $0x28] sm:$0xff]  ;;  %s669_s16 = smov [#allocation2]  }
  0x18   : > { %520 = vmatprep.subr.mxu0 %v667_v1  ;;  %530 = vmatpush3.msra.mxu1 %v334_v4  ;;  %v328_v13 = vld [vmem:[%s889_s3 + $0x40] sm:$0xff]  ;;  %v323_v18 = vld [vmem:[%s889_s3 + $0x18] sm:$0xff]  ;;  %v322_v19 = vld [vmem:[%s889_s3 + $0x10] sm:$0xff]  ;;  %s609_s22 = sshll.u32 %s669_s16, 4  ;;  %s610_s22 = int_to_ptr.vmem [resolvable:$false] %s609_s22 }
  0x19   : > { %521 = vmatpush3.msra.mxu0 %v231_v5  ;;  %531 = vmatprep.subr.mxu1 %v667_v1  ;;  %v324_v17 = vld [vmem:[%s889_s3 + $0x20] sm:$0xff]  ;;  %v321_v20 = vld [vmem:[%s889_s3 + $0x8] sm:$0xff]  ;;  %s611_s17 = scalar_lea.vmem %s610_s22, 256  ;;  %p612_p0 = scmp.lt.s32.totalorder %s423_s10, %s610_s22 }
  0x1a   : > { %522 = vmatprep.subr.mxu0 %v667_v1  ;;  %532 = vmatpush3.msra.mxu1 %v333_v6  ;;  %v320_v21 = vld [vmem:[%s889_s3] sm:$0xff]  ;;  %p613_p1 = scmp.lt.s32.totalorder %s611_s17, %s605_s15 }
  0x1b   : > { %523 = vmatpush3.msra.mxu0 %v230_v7  ;;  %533 = vmatprep.subr.mxu1 %v667_v1  ;;  %v487_v22 = vld [vmem:[%s890_s4] ss:$0 sm:$0xff] }
  0x1c   : > { %525 = vmatmul.mubr.msk.f32.vlgmr.msra.gmra.mxu0 %vm228_vm1, %v220_v8  ;;  %534 = vmatpush3.msra.mxu1 %v332_v9  ;;  %229 = vst.msk [vmem:[%s215_s6] sm:$0xff] %vm228_vm1, %v487_v22  ;;  %v488_v23 = vld [vmem:[%s888_s2] ss:$0 sm:$0xff]  ;;  %p614_p2 = por %p613_p1, %p612_p0 }
  0x1d   : > { %535 = vmatprep.subr.mxu1 %v667_v1  ;;  %559 = vmatprep.mubr.msk.f32.mxu1 %vm668_vm0, %v667_v1 }
  0x1e   : > { %536 = vmatpush3.msra.mxu1 %v331_v10  ;;  %p615_p3 = pnand %p614_p2, %p608_p13 }
  0x1f   : > { %537 = vmatprep.subr.mxu1 %v667_v1 }
  0x20   : > { %538 = vmatpush3.msra.mxu1 %v330_v11 }
  0x21   : > { %539 = vmatprep.subr.mxu1 %v667_v1 }
  0x22   : > { %540 = vmatpush3.msra.mxu1 %v329_v12 }
  0x23   : > { %541 = vmatprep.subr.mxu1 %v667_v1  ;;  %v319_v32 = vld [vmem:[%s215_s6] sm:$0xff] }
  0x24   : > { %542 = vmatpush3.msra.mxu1 %v328_v13 }
  0x25   : > { %543 = vmatprep.subr.mxu1 %v667_v1 }
  0x26   : > { %544 = vmatpush3.msra.mxu1 %v327_v14 }
  0x27   : > { %545 = vmatprep.subr.mxu1 %v667_v1 }
  0x28   : > { %546 = vmatpush3.msra.mxu1 %v326_v15 }
  0x29   : > { %547 = vmatprep.subr.mxu1 %v667_v1 }
  0x2a   : > { %548 = vmatpush3.msra.mxu1 %v325_v16 }
  0x2b   : > { %549 = vmatprep.subr.mxu1 %v667_v1 }
  0x2c   : > { %550 = vmatpush3.msra.mxu1 %v324_v17 }
  0x2d   : > { %551 = vmatprep.subr.mxu1 %v667_v1 }
  0x2e   : > { %552 = vmatpush3.msra.mxu1 %v323_v18 }
  0x2f   : > { %553 = vmatprep.subr.mxu1 %v667_v1 }
  0x30   : > { %554 = vmatpush3.msra.mxu1 %v322_v19 }
  0x31   : > { %555 = vmatprep.subr.mxu1 %v667_v1 }
  0x32   : > { %556 = vmatpush3.msra.mxu1 %v321_v20 }
  0x33   : > { %557 = vmatprep.subr.mxu1 %v667_v1 }
  0x34   : > { %558 = vmatpush3.msra.mxu1 %v320_v21 }
  0xdc   : > { %v310_v24 = vpop.f32.mrf.mxu0 }
  0xdd   : > { %v311_v25 = vadd.f32 %v488_v23, %v310_v24 }
  0xde   : > { %v526_v26 = vpop.f32.mrf.mxu0 }
  0xdf   : > { %v315_v27 = vmul.f32 0.70710677, %v311_v25  ;;  %v314_v29 = vmul.f32 0.5, %v311_v25 }
  0xe1   : > { %603 = verf.f32 %v315_v27 }
  0xee   : > { %v604_v28 = vpop.eup %603 }
  0xef   : > { %v317_v30 = vadd.f32 1.0, %v604_v28 }
  0xf1   : > { %v318_v31 = vmul.f32 %v317_v30, %v314_v29 }
  0xf3   : > { %560 = vmatmul.mubr.f32.vlgmr.msra.gmra.mxu1 %v318_v31 }
 0x1b3   : > { %v402_v33 = vpop.f32.mrf.mxu1 }
 0x1b4   : > { %v406_v34 = vadd.f32 %v402_v33, %v319_v32 }
 0x1b5   : > { %v561_v35 = vpop.f32.mrf.mxu1 }
 0x1b6   : > { %407 = vst.msk [vmem:[%s215_s6] sm:$0xff] %vm228_vm1, %v406_v34 }
 0x1b7   : > { %618 = shalt.err (!%p615_p3)
}
 0x1b8   : > { %s619_s25 = scalar_lea.hbm %s850_s13, 128  ;;  %s623_s30 = scalar_lea.hbm %s891_s5, 256 }
 0x1b9   : > { %p620_p4 = scmp.ne.s32.totalorder %s850_s13, %s619_s25  ;;  %p624_p9 = scmp.lt.s32.totalorder %s850_s13, %s891_s5 }
 0x1ba   : > { %p625_p10 = scmp.lt.s32.totalorder %s623_s30, %s619_s25 }
 0x1bb   : > { %p621_p7 = pnand %p620_p4, %p738_p5 }
 0x1bc   : > { %p626_p11 = por %p625_p10, %p624_p9 }
 0x1bd   : > { %p622_p8 = pneg %p621_p7 }
 0x1bf   : > { %p627_p12 = pnand %p626_p11, %p622_p8 }
 0x1c1   : > { %630 = shalt.err (!%p627_p12)
}
 0x1c2   : > { %562 = dma.vmem_to_hbm [thread:$0]  (%p738_p5), %s423_s10, 128, %s850_s13, %s409_s14  }
 0x1c3 PF: > { %p568_p13 = scmp.ge.s32.totalorder %s665_s21, 2  ;;  %s434_s8 = sand.u32 1, %s653_s18  }
 0x1c4   : > { %s435_s9 = scalar_lea.sflag [#allocation3], %s434_s8 }
 0x1c5   : > { %p565_p0 = pnand %p568_p13, %p742_p6 }
 0x1c7   : > { %p566_p1 = pneg %p565_p0 }
 0x1c9   : > { %648 = dma.done.wait (%p566_p1), %s435_s9, 128  }
 0x1ca   : > { %650 = vsyncadd (%p566_p1), %s435_s9, 4294967168  ;;  %p15_p2 = scmp.ge.s32.totalorder %s725_s24, 4   ;;  %s894_s18 = smov %s657_s19 }
 0x1cb   : > { %s895_s19 = smov %s661_s20  ;;  %s896_s20 = smov %s736_s27 }
 0x1cc   : > { %s897_s21 = smov %s725_s24  ;;  %17 = sbr.rel (!%p15_p2) target bundleno = 3 (0x3), region = 75 }
 0x1d1   :  { %440 = vsyncpa [#allocation3], 1 }
 0x1d2   :  { %442 = vsyncpa [#allocation3 + $0x1], 1 }

</bundles_post_ra>
